<compile_context>
chip_gen: v5e
topology: v5e:2x2
jax: 0.10.0
libtpu: 0.0.40
codegen_flags: <defaults>
</compile_context>

<pallas_src>
import jax
import jax.numpy as jnp
from jax.experimental import pallas as pl
from jax.experimental.pallas import tpu as pltpu


# ----------------------------------------------------------------------------
# Kernel
# ----------------------------------------------------------------------------
def _fused_kernel(x_ref,
                  w1_ref, b1_ref,
                  w2_ref, b2_ref,
                  w3_ref, b3_ref,
                  wc_ref, bc_ref,
                  pred_ref, spec_ref):
    # x_ref: (n_mels, TF).  Transpose on the XLU, log on the EUP -- both units
    # are idle in this HBM-bandwidth-bound kernel.
    spec = jnp.log(jnp.transpose(x_ref[...], (1, 0)) + 1e-8)   # (TF, n_mels) f32
    spec_ref[...] = spec.astype(spec_ref.dtype)

    # Three Linear+ReLU layers and the classifier; f32 MXU with f32 accumulation.
    h = jnp.dot(spec, w1_ref[...], preferred_element_type=jnp.float32) + b1_ref[...]
    h = jnp.maximum(h, 0.0)
    h = jnp.dot(h, w2_ref[...], preferred_element_type=jnp.float32) + b2_ref[...]
    h = jnp.maximum(h, 0.0)
    h = jnp.dot(h, w3_ref[...], preferred_element_type=jnp.float32) + b3_ref[...]
    h = jnp.maximum(h, 0.0)
    pred = jnp.dot(h, wc_ref[...], preferred_element_type=jnp.float32) + bc_ref[...]
    pred_ref[...] = pred.astype(pred_ref.dtype)                # (TF, out_dim)


# ----------------------------------------------------------------------------
# Generation-aware sizing helpers
# ----------------------------------------------------------------------------
def _physical_vmem_bytes():
    try:
        info = pltpu.get_tpu_info()
        return int(getattr(info, "vmem_capacity_bytes", 64 * 1024 * 1024))
    except Exception:
        return 64 * 1024 * 1024          # v7x-safe fallback


def _target_tile_rows():
    """Frame rows per grid step so the ~0.35us/step overhead stays small
    relative to each step's HBM time (bigger bandwidth -> bigger tiles)."""
    try:
        ver = str(getattr(pltpu.get_tpu_info(), "chip_version", ""))
    except Exception:
        ver = ""
    if "7" in ver:
        return 8192        # v7x  (~3.2 TB/s)
    if "6" in ver:
        return 4096        # v6e  (~1.4 TB/s)
    return 2048            # v5e and unknown (~0.8 TB/s)


def _choose_tile_frames(n_frames, batch, target_rows):
    """Block last dim (frames) must be a multiple of 128 or span the axis."""
    if n_frames <= 128:
        return n_frames
    if n_frames <= target_rows and (batch >= 2 or n_frames < 256):
        return n_frames
    tf = max(128, (min(target_rows, n_frames) // 128) * 128)
    if batch == 1:
        # Keep >= 2 grid steps so both v7x TensorCores get work.
        while tf > 128 and pl.cdiv(n_frames, tf) < 2:
            tf -= 128
    return tf


def _vmem_limit_bytes(tf, n_mels, h1, h2, h3, out_dim):
    f32, dbl = 4, 2                                   # double-buffered blocks
    io = dbl * f32 * tf * (2 * n_mels + out_dim)      # x in, spec out, pred out
    wb = dbl * f32 * (n_mels * h1 + h1 * h2 + h2 * h3 + h3 * out_dim
                      + h1 + h2 + h3 + out_dim)       # resident weights/biases
    live = 4 * f32 * tf * max(n_mels, h1, h2, h3, out_dim, 128)   # temps slack
    est = 2 * (io + wb + live)
    cap = int(0.8 * _physical_vmem_bytes())           # ~51 MiB v7x, ~102 MiB v5e/v6e
    return int(min(max(est, 8 * 1024 * 1024), cap))


# ----------------------------------------------------------------------------
# Wrapper
# ----------------------------------------------------------------------------
@jax.jit
def simple_linear_forward(x, params):
    """x: (B, n_mels, n_frames) float32.  Returns dict like the torch module."""
    B, n_mels, n_frames = x.shape
    w1, b1, w2, b2, w3, b3, wc, bc = params
    input_dim, h1 = w1.shape
    h2, h3, out_dim = w2.shape[1], w3.shape[1], wc.shape[1]
    assert input_dim == n_mels, "linear1 input_dim must equal n_mels after transpose(1,2)"

    TF = _choose_tile_frames(n_frames, B, _target_tile_rows())
    grid = (B, pl.cdiv(n_frames, TF))

    flops = 2 * B * n_frames * (n_mels * h1 + h1 * h2 + h2 * h3 + h3 * out_dim)
    bytes_accessed = (4 * B * n_frames * (2 * n_mels + out_dim)
                      + 4 * (n_mels * h1 + h1 * h2 + h2 * h3 + h3 * out_dim
                             + h1 + h2 + h3 + out_dim))
    cost = pl.CostEstimate(flops=int(flops),
                           transcendentals=int(B * n_frames * n_mels),
                           bytes_accessed=int(bytes_accessed))

    pred, spec = pl.pallas_call(
        _fused_kernel,
        out_shape=(
            jax.ShapeDtypeStruct((B, n_frames, out_dim), jnp.float32),
            jax.ShapeDtypeStruct((B, n_frames, n_mels), jnp.float32),
        ),
        grid=grid,
        in_specs=[
            pl.BlockSpec((None, n_mels, TF), lambda b, f: (b, 0, f)),   # x (pipelined)
            pl.BlockSpec((n_mels, h1), lambda b, f: (0, 0)),            # w1 (resident)
            pl.BlockSpec((1, h1), lambda b, f: (0, 0)),                 # b1
            pl.BlockSpec((h1, h2), lambda b, f: (0, 0)),                # w2
            pl.BlockSpec((1, h2), lambda b, f: (0, 0)),                 # b2
            pl.BlockSpec((h2, h3), lambda b, f: (0, 0)),                # w3
            pl.BlockSpec((1, h3), lambda b, f: (0, 0)),                 # b3
            pl.BlockSpec((h3, out_dim), lambda b, f: (0, 0)),           # wc
            pl.BlockSpec((1, out_dim), lambda b, f: (0, 0)),            # bc
        ],
        out_specs=(
            pl.BlockSpec((None, TF, out_dim), lambda b, f: (b, f, 0)),  # prediction
            pl.BlockSpec((None, TF, n_mels), lambda b, f: (b, f, 0)),   # spectrogram
        ),
        compiler_params=pltpu.CompilerParams(
            dimension_semantics=("parallel", "parallel"),
            vmem_limit_bytes=_vmem_limit_bytes(TF, n_mels, h1, h2, h3, out_dim),
        ),
        cost_estimate=cost,
    )(x, w1, b1, w2, b2, w3, b3, wc, bc)

    return {"prediction": pred, "spectrogram": spec}


# ----------------------------------------------------------------------------
# Parameter init (nn.Linear-style) and pure-JAX reference
# ----------------------------------------------------------------------------
def init_params(key, input_dim, h1, h2, h3, out_dim):
    """Uniform +/- 1/sqrt(fan_in); weights (in, out), biases (1, out)."""
    dims = [(input_dim, h1), (h1, h2), (h2, h3), (h3, out_dim)]
    params = []
    for fan_in, fan_out in dims:
        key, kw, kb = jax.random.split(key, 3)
        bound = 1.0 / (fan_in ** 0.5)
        w = jax.random.uniform(kw, (fan_in, fan_out), jnp.float32, -bound, bound)
        b = jax.random.uniform(kb, (1, fan_out), jnp.float32, -bound, bound)
        params += [w, b]
    return tuple(params)


def _reference_forward(x, params):
    w1, b1, w2, b2, w3, b3, wc, bc = params
    spec = jnp.log(jnp.transpose(x, (0, 2, 1)) + 1e-8)
    hi = jax.lax.Precision.HIGHEST

    def lin(a, w, b):
        return jnp.dot(a, w, precision=hi, preferred_element_type=jnp.float32) + b

    h = jnp.maximum(lin(spec, w1, b1), 0.0)
    h = jnp.maximum(lin(h, w2, b2), 0.0)
    h = jnp.maximum(lin(h, w3, b3), 0.0)
    return lin(h, wc, bc), spec


if __name__ == "__main__":
    # Small shapes consistent with the module: x is (B, n_mels, n_frames); the
    # transpose(1,2) makes linear1 act per frame, so input_dim == n_mels.
    B, n_mels, n_frames = 2, 128, 128
    hidden_dim1, hidden_dim2, hidden_dim3 = 64, 64, 32
    output_dim = 16

    key = jax.random.PRNGKey(0)
    key, kx = jax.random.split(key)
    # positive input so log() is well defined (spectrograms are non-negative)
    x = jax.random.uniform(kx, (B, n_mels, n_frames), jnp.float32, 0.01, 1.0)
    params = init_params(key, n_mels, hidden_dim1, hidden_dim2, hidden_dim3, output_dim)

    out = simple_linear_forward(x, params)
    jax.block_until_ready(out["prediction"])
    jax.block_until_ready(out["spectrogram"])

    pred_ref, spec_ref = _reference_forward(x, params)
    assert out["spectrogram"].shape == (B, n_frames, n_mels)
    assert out["prediction"].shape == (B, n_frames, output_dim)
    assert jnp.allclose(out["spectrogram"], spec_ref, atol=1e-5)
    assert jnp.allclose(out["prediction"], pred_ref, atol=2e-2, rtol=2e-2)

    print("KERNEL_OK")
</pallas_src>

<mosaic_0001>
module attributes {stable_mosaic.version = 11 : i64} {
  func.func @_fused_kernel(%arg0: i32, %arg1: i32, %arg2: memref<1x128x128xf32, #tpu.memory_space<vmem>>, %arg3: memref<128x64xf32, #tpu.memory_space<vmem>>, %arg4: memref<1x64xf32, #tpu.memory_space<vmem>>, %arg5: memref<64x64xf32, #tpu.memory_space<vmem>>, %arg6: memref<1x64xf32, #tpu.memory_space<vmem>>, %arg7: memref<64x32xf32, #tpu.memory_space<vmem>>, %arg8: memref<1x32xf32, #tpu.memory_space<vmem>>, %arg9: memref<32x16xf32, #tpu.memory_space<vmem>>, %arg10: memref<1x16xf32, #tpu.memory_space<vmem>>, %arg11: memref<1x128x16xf32, #tpu.memory_space<vmem>>, %arg12: memref<1x128x128xf32, #tpu.memory_space<vmem>>) attributes {dimension_semantics = [#tpu.dimension_semantics<parallel>, #tpu.dimension_semantics<parallel>], iteration_bounds = array<i64: 2, 1>, scalar_prefetch = 0 : i64, scratch_operands = 0 : i64, tpu.core_type = #tpu.core_type<tc>, window_params = [{transform_indices = @transform_0, window_bounds = array<i64: 1, 128, 128>}, {pipeline_mode = #tpu.pipeline_mode<synchronous>, transform_indices = @transform_1, window_bounds = array<i64: 128, 64>}, {pipeline_mode = #tpu.pipeline_mode<synchronous>, transform_indices = @transform_2, window_bounds = array<i64: 1, 64>}, {pipeline_mode = #tpu.pipeline_mode<synchronous>, transform_indices = @transform_3, window_bounds = array<i64: 64, 64>}, {pipeline_mode = #tpu.pipeline_mode<synchronous>, transform_indices = @transform_4, window_bounds = array<i64: 1, 64>}, {pipeline_mode = #tpu.pipeline_mode<synchronous>, transform_indices = @transform_5, window_bounds = array<i64: 64, 32>}, {pipeline_mode = #tpu.pipeline_mode<synchronous>, transform_indices = @transform_6, window_bounds = array<i64: 1, 32>}, {pipeline_mode = #tpu.pipeline_mode<synchronous>, transform_indices = @transform_7, window_bounds = array<i64: 32, 16>}, {pipeline_mode = #tpu.pipeline_mode<synchronous>, transform_indices = @transform_8, window_bounds = array<i64: 1, 16>}, {transform_indices = @transform_9, window_bounds = array<i64: 1, 128, 16>}, {transform_indices = @transform_10, window_bounds = array<i64: 1, 128, 128>}]} {
    %c0 = arith.constant 0 : index
    %c0_0 = arith.constant 0 : index
    %c0_1 = arith.constant 0 : index
    %0 = vector.load %arg2[%c0, %c0_0, %c0_1] : memref<1x128x128xf32, #tpu.memory_space<vmem>>, vector<1x128x128xf32>
    %1 = vector.shape_cast %0 : vector<1x128x128xf32> to vector<128x128xf32>
    %2 = tpu.transpose %1, [1, 0] : vector<128x128xf32> -> vector<128x128xf32>
    %cst = arith.constant 9.99999993E-9 : f32
    %3 = vector.broadcast %cst : f32 to vector<128x128xf32>
    %4 = arith.addf %2, %3 : vector<128x128xf32>
    %5 = math.log %4 : vector<128x128xf32>
    %c0_2 = arith.constant 0 : index
    %c0_3 = arith.constant 0 : index
    %c0_4 = arith.constant 0 : index
    %6 = vector.load %arg12[%c0_2, %c0_3, %c0_4] : memref<1x128x128xf32, #tpu.memory_space<vmem>>, vector<1x128x128xf32>
    %7 = vector.shape_cast %6 : vector<1x128x128xf32> to vector<128x128xf32>
    %8 = vector.shape_cast %5 : vector<128x128xf32> to vector<1x128x128xf32>
    tpu.vector_store %arg12[%c0_2, %c0_3, %c0_4], %8 {strides = array<i32>} : memref<1x128x128xf32, #tpu.memory_space<vmem>>, vector<1x128x128xf32>,
    %c0_5 = arith.constant 0 : index
    %c0_6 = arith.constant 0 : index
    %9 = vector.load %arg3[%c0_5, %c0_6] : memref<128x64xf32, #tpu.memory_space<vmem>>, vector<128x64xf32>
    %cst_7 = arith.constant dense<0.000000e+00> : vector<128x64xf32>
    %10 = tpu.matmul %5, %9, %cst_7 {dimension_numbers = #tpu.dot_dimension_numbers<[1], [0], [0], [1], [0, 0, 1, 1], [], []>} : vector<128x128xf32>, vector<128x64xf32>, vector<128x64xf32> -> vector<128x64xf32>
    %c0_8 = arith.constant 0 : index
    %c0_9 = arith.constant 0 : index
    %11 = vector.load %arg4[%c0_8, %c0_9] : memref<1x64xf32, #tpu.memory_space<vmem>>, vector<1x64xf32>
    %12 = vector.broadcast %11 : vector<1x64xf32> to vector<128x64xf32>
    %13 = arith.addf %10, %12 : vector<128x64xf32>
    %cst_10 = arith.constant 0.000000e+00 : f32
    %14 = vector.broadcast %cst_10 : f32 to vector<128x64xf32>
    %15 = arith.maximumf %13, %14 : vector<128x64xf32>
    %c0_11 = arith.constant 0 : index
    %c0_12 = arith.constant 0 : index
    %16 = vector.load %arg5[%c0_11, %c0_12] : memref<64x64xf32, #tpu.memory_space<vmem>>, vector<64x64xf32>
    %cst_13 = arith.constant dense<0.000000e+00> : vector<128x64xf32>
    %17 = tpu.matmul %15, %16, %cst_13 {dimension_numbers = #tpu.dot_dimension_numbers<[1], [0], [0], [1], [0, 0, 1, 1], [], []>} : vector<128x64xf32>, vector<64x64xf32>, vector<128x64xf32> -> vector<128x64xf32>
    %c0_14 = arith.constant 0 : index
    %c0_15 = arith.constant 0 : index
    %18 = vector.load %arg6[%c0_14, %c0_15] : memref<1x64xf32, #tpu.memory_space<vmem>>, vector<1x64xf32>
    %19 = vector.broadcast %18 : vector<1x64xf32> to vector<128x64xf32>
    %20 = arith.addf %17, %19 : vector<128x64xf32>
    %cst_16 = arith.constant 0.000000e+00 : f32
    %21 = vector.broadcast %cst_16 : f32 to vector<128x64xf32>
    %22 = arith.maximumf %20, %21 : vector<128x64xf32>
    %c0_17 = arith.constant 0 : index
    %c0_18 = arith.constant 0 : index
    %23 = vector.load %arg7[%c0_17, %c0_18] : memref<64x32xf32, #tpu.memory_space<vmem>>, vector<64x32xf32>
    %cst_19 = arith.constant dense<0.000000e+00> : vector<128x32xf32>
    %24 = tpu.matmul %22, %23, %cst_19 {dimension_numbers = #tpu.dot_dimension_numbers<[1], [0], [0], [1], [0, 0, 1, 1], [], []>} : vector<128x64xf32>, vector<64x32xf32>, vector<128x32xf32> -> vector<128x32xf32>
    %c0_20 = arith.constant 0 : index
    %c0_21 = arith.constant 0 : index
    %25 = vector.load %arg8[%c0_20, %c0_21] : memref<1x32xf32, #tpu.memory_space<vmem>>, vector<1x32xf32>
    %26 = vector.broadcast %25 : vector<1x32xf32> to vector<128x32xf32>
    %27 = arith.addf %24, %26 : vector<128x32xf32>
    %cst_22 = arith.constant 0.000000e+00 : f32
    %28 = vector.broadcast %cst_22 : f32 to vector<128x32xf32>
    %29 = arith.maximumf %27, %28 : vector<128x32xf32>
    %c0_23 = arith.constant 0 : index
    %c0_24 = arith.constant 0 : index
    %30 = vector.load %arg9[%c0_23, %c0_24] : memref<32x16xf32, #tpu.memory_space<vmem>>, vector<32x16xf32>
    %cst_25 = arith.constant dense<0.000000e+00> : vector<128x16xf32>
    %31 = tpu.matmul %29, %30, %cst_25 {dimension_numbers = #tpu.dot_dimension_numbers<[1], [0], [0], [1], [0, 0, 1, 1], [], []>} : vector<128x32xf32>, vector<32x16xf32>, vector<128x16xf32> -> vector<128x16xf32>
    %c0_26 = arith.constant 0 : index
    %c0_27 = arith.constant 0 : index
    %32 = vector.load %arg10[%c0_26, %c0_27] : memref<1x16xf32, #tpu.memory_space<vmem>>, vector<1x16xf32>
    %33 = vector.broadcast %32 : vector<1x16xf32> to vector<128x16xf32>
    %34 = arith.addf %31, %33 : vector<128x16xf32>
    %c0_28 = arith.constant 0 : index
    %c0_29 = arith.constant 0 : index
    %c0_30 = arith.constant 0 : index
    %35 = vector.load %arg11[%c0_28, %c0_29, %c0_30] : memref<1x128x16xf32, #tpu.memory_space<vmem>>, vector<1x128x16xf32>
    %36 = vector.shape_cast %35 : vector<1x128x16xf32> to vector<128x16xf32>
    %37 = vector.shape_cast %34 : vector<128x16xf32> to vector<1x128x16xf32>
    tpu.vector_store %arg11[%c0_28, %c0_29, %c0_30], %37 {strides = array<i32>} : memref<1x128x16xf32, #tpu.memory_space<vmem>>, vector<1x128x16xf32>,
    return
  }
  func.func @transform_0(%arg0: i32, %arg1: i32) -> (i32, i32, i32) {
    %c0_i32 = arith.constant 0 : i32
    %c0_i32_0 = arith.constant 0 : i32
    return %arg0, %c0_i32, %arg1 : i32, i32, i32
  }
  func.func @transform_1(%arg0: i32, %arg1: i32) -> (i32, i32) {
    %c0_i32 = arith.constant 0 : i32
    %c0_i32_0 = arith.constant 0 : i32
    %c0_i32_1 = arith.constant 0 : i32
    return %c0_i32, %c0_i32_0 : i32, i32
  }
  func.func @transform_2(%arg0: i32, %arg1: i32) -> (i32, i32) {
    %c0_i32 = arith.constant 0 : i32
    %c0_i32_0 = arith.constant 0 : i32
    %c0_i32_1 = arith.constant 0 : i32
    return %c0_i32, %c0_i32_0 : i32, i32
  }
  func.func @transform_3(%arg0: i32, %arg1: i32) -> (i32, i32) {
    %c0_i32 = arith.constant 0 : i32
    %c0_i32_0 = arith.constant 0 : i32
    %c0_i32_1 = arith.constant 0 : i32
    return %c0_i32, %c0_i32_0 : i32, i32
  }
  func.func @transform_4(%arg0: i32, %arg1: i32) -> (i32, i32) {
    %c0_i32 = arith.constant 0 : i32
    %c0_i32_0 = arith.constant 0 : i32
    %c0_i32_1 = arith.constant 0 : i32
    return %c0_i32, %c0_i32_0 : i32, i32
  }
  func.func @transform_5(%arg0: i32, %arg1: i32) -> (i32, i32) {
    %c0_i32 = arith.constant 0 : i32
    %c0_i32_0 = arith.constant 0 : i32
    %c0_i32_1 = arith.constant 0 : i32
    return %c0_i32, %c0_i32_0 : i32, i32
  }
  func.func @transform_6(%arg0: i32, %arg1: i32) -> (i32, i32) {
    %c0_i32 = arith.constant 0 : i32
    %c0_i32_0 = arith.constant 0 : i32
    %c0_i32_1 = arith.constant 0 : i32
    return %c0_i32, %c0_i32_0 : i32, i32
  }
  func.func @transform_7(%arg0: i32, %arg1: i32) -> (i32, i32) {
    %c0_i32 = arith.constant 0 : i32
    %c0_i32_0 = arith.constant 0 : i32
    %c0_i32_1 = arith.constant 0 : i32
    return %c0_i32, %c0_i32_0 : i32, i32
  }
  func.func @transform_8(%arg0: i32, %arg1: i32) -> (i32, i32) {
    %c0_i32 = arith.constant 0 : i32
    %c0_i32_0 = arith.constant 0 : i32
    %c0_i32_1 = arith.constant 0 : i32
    return %c0_i32, %c0_i32_0 : i32, i32
  }
  func.func @transform_9(%arg0: i32, %arg1: i32) -> (i32, i32, i32) {
    %c0_i32 = arith.constant 0 : i32
    %c0_i32_0 = arith.constant 0 : i32
    return %arg0, %arg1, %c0_i32 : i32, i32, i32
  }
  func.func @transform_10(%arg0: i32, %arg1: i32) -> (i32, i32, i32) {
    %c0_i32 = arith.constant 0 : i32
    %c0_i32_0 = arith.constant 0 : i32
    return %arg0, %arg1, %c0_i32 : i32, i32, i32
  }
}

</mosaic_0001>

<bundles_post_ra>
// kernel: simple_linear_forward.1
= control target key start
LH: loop header
LB: loop body
LE: loop exit
PB: predicated region body
PF: predicated region fallthrough
CT: control target
= control target key end

     0   :  { %s1890_s0 = inlined_call_operand.vmem [shape: f32[2,128,128], index: 0, kind: input, shape index: {}]   ;;  %s1891_s1 = inlined_call_operand.vmem [shape: f32[128,64], index: 1, kind: input, shape index: {}]   ;;  %s1892_s2 = inlined_call_operand.vmem [shape: f32[1,64], index: 2, kind: input, shape index: {}]   ;;  %s1893_s3 = inlined_call_operand.vmem [shape: f32[64,64], index: 3, kind: input, shape index: {}]   ;;  %s1894_s4 = inlined_call_operand.vmem [shape: f32[1,64], index: 4, kind: input, shape index: {}]   ;;  %s1895_s5 = inlined_call_operand.vmem [shape: f32[64,32], index: 5, kind: input, shape index: {}]   ;;  %s1896_s6 = inlined_call_operand.vmem [shape: f32[1,32], index: 6, kind: input, shape index: {}]   ;;  %s1897_s7 = inlined_call_operand.vmem [shape: f32[32,16], index: 7, kind: input, shape index: {}]   ;;  %s1898_s8 = inlined_call_operand.vmem [shape: f32[1,16], index: 8, kind: input, shape index: {}]   ;;  %s1899_s9 = inlined_call_operand.vmem [shape: f32[2,128,16], index: 9, kind: output, shape index: {0}]   ;;  %s1900_s10 = inlined_call_operand.hbm [shape: f32[2,128,128], index: 10, kind: output, shape index: {1}]  }
   0x1   :  { %1902 = sst [smem:[#allocation5_spill]] %s1890_s0 }
   0x2   :  { %1903 = sst [smem:[#allocation6_spill]] %s1891_s1 }
   0x3   :  { %1904 = sst [smem:[#allocation7_spill]] %s1892_s2 }
   0x4   :  { %1905 = sst [smem:[#allocation8_spill]] %s1893_s3 }
   0x5   :  { %1906 = sst [smem:[#allocation9_spill]] %s1894_s4 }
   0x6   :  { %16 = vsyncpa [#allocation3], 0 }
   0x7   :  { %18 = vsyncpa [#allocation3 + $0x1], 0  ;;  %s1486_s13 = smov 0   ;;  %s1488_s14 = smov 0  }
   0x8   :  { %s1490_s15 = smov 0   ;;  %s1492_s16 = smov 0  }
   0x9   :  { %s1494_s17 = smov 0   ;;  %s1496_s18 = smov 0  }
   0xa LB: > { %s1190_s19 = sadd.s32 4294967295, %s1427_s18   ;;  %s1191_s20 = sadd.s32 4294967294, %s1427_s18   ;;  %s1427_s18 = sphi %s1496_s18, %s24_s18   ;;  %s1423_s17 = sphi %s1494_s17, %s1919_s17   ;;  %s1419_s16 = sphi %s1492_s16, %s1918_s16   ;;  %s1415_s15 = sphi %s1490_s15, %s1917_s15   ;;  %s1411_s14 = sphi %s1488_s14, %s1916_s14   ;;  %s1407_s13 = sphi %s1486_s13, %s1915_s13  }
   0xb   : > { %s36_s21 = sadd.s32 1, %s1423_s17  ;;  %s269_s22 = sadd.s32 1, %s1415_s15 }
   0xc   : > { %p38_p0 = scmp.ge.s32.totalorder %s36_s21, 2  ;;  %p279_p1 = scmp.ne.s32.totalorder %s1415_s15, %s1411_s14 }
   0xd   : > { %p280_p2 = scmp.eq.s32.totalorder %s1190_s19, 1  ;;  %p285_p3 = scmp.ne.s32.totalorder %s1411_s14, %s1407_s13 }
   0xe   : > { %s1921_s21 = smov (%p38_p0, %s36_s21), 0  ;;  %p286_p5 = scmp.eq.s32.totalorder %s1191_s20, 1 }
   0xf   : > { %p1526_p4 = por %p280_p2, %p279_p1  ;;  %s264_s24 = ssub.s32 %s1423_s17, %s1921_s21 }
  0x10   : > { %p1194_p6 = scmp.ge.s32.totalorder %s1427_s18, 1  ;;  %p267_p7 = scmp.eq.s32.totalorder %s264_s24, 0 }
  0x11   : > { %p1533_p8 = por %p286_p5, %p285_p3  ;;  %p339_p9 = scmp.lt.s32.totalorder %s1427_s18, 3 }
  0x12   : > { %s1539_s26 = scalar_select %p267_p7, %s1415_s15, %s269_s22  }
  0x13   : > { %p340_p10 = pnand %p1194_p6, %p339_p9 }
  0x14   : > { %p389_p11 = scmp.lt.s32.totalorder (!%p340_p10), %s1419_s16, 1  ;;  %s1909_s0 = sld [smem:[#allocation5_spill]] (!%p340_p10) }
  0x15   : > { %343 = sbr.rel (%p340_p10) target bundleno = 858 (0x35a), region = 56  ;;  %s1910_s1 = sld [smem:[#allocation6_spill]] (!%p340_p10) }
  0x16   : > { %s386_s24 = sand.u32 (!%p340_p10), 1, %s1411_s14   ;;  %s1911_s3 = sld [smem:[#allocation8_spill]] (!%p340_p10) }
  0x17   : > { %s1912_s2 = sld [smem:[#allocation7_spill]] (!%p340_p10)  ;;  %s1255_s22 = sshll.u32 (!%p340_p10), %s1419_s16, 7 }
  0x18   : > { %s1913_s4 = sld [smem:[#allocation9_spill]] (!%p340_p10)  ;;  %s1070_s30 = scalar_lea.hbm (!%p340_p10), %s1900_s10, %s1255_s22 }
  0x19   : > { %s1053_s19 = scalar_lea.sflag (!%p340_p10), [#allocation3], %s386_s24 }
  0x1a   : > { %s1543_s27 = scalar_select %p389_p11, %s1419_s16, 1  ;;  %vm633_vm0 = vcmask 523264   ;;  %vm912_vm1 = vcmask 261120  }
  0x1b   : > { %v535_v12 = vld [vmem:[%s1910_s1 + $0x78] sm:$0xff]  ;;  %v534_v13 = vld [vmem:[%s1910_s1 + $0x70] sm:$0xff]  ;;  %v533_v14 = vld [vmem:[%s1910_s1 + $0x68] sm:$0xff]  ;;  %s1369_s16 = scalar_lea.hbm %s1900_s10, 256 }
  0x1c   : > { %s1901_s28 = sshll.u32 %s1543_s27, 7  ;;  %540 = vmatpush.msra.mxu0 %v535_v12  ;;  %v532_v15 = vld [vmem:[%s1910_s1 + $0x60] sm:$0xff]  ;;  %v531_v17 = vld [vmem:[%s1910_s1 + $0x58] sm:$0xff]  ;;  %v530_v18 = vld [vmem:[%s1910_s1 + $0x50] sm:$0xff] }
  0x1d   : > { %s1551_s11 = scalar_lea.vmem %s1909_s0, %s1901_s28  ;;  %v529_v19 = vld [vmem:[%s1910_s1 + $0x48] sm:$0xff]  ;;  %v528_v20 = vld [vmem:[%s1910_s1 + $0x40] sm:$0xff]  ;;  %v527_v22 = vld [vmem:[%s1910_s1 + $0x38] sm:$0xff]  ;;  %s1195_s28 = sshll.u32 %s386_s24, 7 }
  0x1e   : > { %v408_v0 = vld [vmem:[%s1551_s11] sm:$0xff]  ;;  %v409_v1 = vld [vmem:[%s1551_s11 + $0x8] sm:$0xff]  ;;  %v410_v2 = vld [vmem:[%s1551_s11 + $0x10] sm:$0xff]  ;;  %541 = vmatpush.msra.mxu0 %v534_v13  ;;  %s1620_s29 = scalar_lea.vmem [#allocation2], %s1195_s28 }
  0x1f   : > { %424 = vxpose.xlu0.b32.start [1/16] %v408_v0, 128  ;;  %v411_v3 = vld [vmem:[%s1551_s11 + $0x18] sm:$0xff]  ;;  %v412_v4 = vld [vmem:[%s1551_s11 + $0x20] sm:$0xff]  ;;  %v413_v5 = vld [vmem:[%s1551_s11 + $0x28] sm:$0xff]  ;;  %s1071_s12 = sshll.u32 %s1620_s29, 4  ;;  %s1072_s12 = int_to_ptr.vmem [resolvable:$true] %s1071_s12 }
  0x20   : > { %v414_v6 = vld [vmem:[%s1551_s11 + $0x30] sm:$0xff]  ;;  %v415_v7 = vld [vmem:[%s1551_s11 + $0x38] sm:$0xff]  ;;  %v416_v8 = vld [vmem:[%s1551_s11 + $0x40] sm:$0xff]  ;;  %542 = vmatpush.msra.mxu0 %v533_v14 }
  0x21   : > { %v417_v9 = vld [vmem:[%s1551_s11 + $0x48] sm:$0xff]  ;;  %v418_v10 = vld [vmem:[%s1551_s11 + $0x50] sm:$0xff]  ;;  %v419_v11 = vld [vmem:[%s1551_s11 + $0x58] sm:$0xff] }
  0x22   : > { %v420_v16 = vld [vmem:[%s1551_s11 + $0x60] sm:$0xff]  ;;  %543 = vmatpush.msra.mxu0 %v532_v15  ;;  %v421_v21 = vld [vmem:[%s1551_s11 + $0x68] sm:$0xff]  ;;  %v526_v23 = vld [vmem:[%s1910_s1 + $0x30] sm:$0xff] }
  0x23   : > { %v422_v24 = vld [vmem:[%s1551_s11 + $0x70] sm:$0xff]  ;;  %v423_v25 = vld [vmem:[%s1551_s11 + $0x78] sm:$0xff]  ;;  %v525_v26 = vld [vmem:[%s1910_s1 + $0x28] sm:$0xff]  ;;  %s1073_s11 = sshll.u32 %s1070_s30, 4  ;;  %s1074_s11 = int_to_ptr.hbm [resolvable:$true] %s1073_s11 }
  0x24   : > { %544 = vmatpush.msra.mxu0 %v531_v17  ;;  %v524_v27 = vld [vmem:[%s1910_s1 + $0x20] sm:$0xff]  ;;  %v523_v28 = vld [vmem:[%s1910_s1 + $0x18] sm:$0xff]  ;;  %v522_v29 = vld [vmem:[%s1910_s1 + $0x10] sm:$0xff]  ;;  %s1363_s20 = sshra.s32 %s1074_s11, 4  ;;  %s1364_s20 = int_to_ptr.hbm [resolvable:$true] %s1363_s20 }
  0x25   : > { %v521_v30 = vld [vmem:[%s1910_s1 + $0x8] sm:$0xff]  ;;  %v520_v31 = vld [vmem:[%s1910_s1] sm:$0xff]  ;;  %v628_v14 = vld [vmem:[%s1911_s3 + $0x38] sm:$0xff]  ;;  %s1365_s1 = scalar_lea.hbm %s1364_s20, 128  ;;  %p1370_p1 = scmp.lt.s32.totalorder %s1364_s20, %s1900_s10 }
  0x26   : > { %545 = vmatpush.msra.mxu0 %v530_v18  ;;  %v627_v15 = vld [vmem:[%s1911_s3 + $0x30] sm:$0xff]  ;;  %690 = vmatpush.msra.mxu1 %v628_v14  ;;  %p1366_p12 = scmp.ne.s32.totalorder %s1364_s20, %s1365_s1  ;;  %p1371_p2 = scmp.lt.s32.totalorder %s1369_s16, %s1365_s1 }
  0x27   : > { %425 = vxpose.xlu0.b32.cont [2/16] %v409_v1, 128 }
  0x28   : > { %546 = vmatpush.msra.mxu0 %v529_v19  ;;  %691 = vmatpush.msra.mxu1 %v627_v15  ;;  %v768_v15 = vld [vmem:[%s1895_s5 + $0x28] sm:$0xff]  ;;  %p1367_p13 = pnand %p1366_p12, %p1526_p4  ;;  %p1372_p3 = por %p1371_p2, %p1370_p1 }
  0x2a   : > { %547 = vmatpush.msra.mxu0 %v528_v20  ;;  %p1368_p0 = pneg %p1367_p13 }
  0x2c   : > { %548 = vmatpush.msra.mxu0 %v527_v22  ;;  %v624_v22 = vld [vmem:[%s1911_s3 + $0x18] sm:$0xff]  ;;  %p1373_p5 = pnand %p1372_p3, %p1368_p0 }
  0x2e   : > { %549 = vmatpush.msra.mxu0 %v526_v23 }
  0x2f   : > { %426 = vxpose.xlu0.b32.cont [3/16] %v410_v2, 128 }
  0x30   : > { %550 = vmatpush.msra.mxu0 %v525_v26 }
  0x32   : > { %551 = vmatpush.msra.mxu0 %v524_v27 }
  0x34   : > { %552 = vmatpush.msra.mxu0 %v523_v28  ;;  %v622_v28 = vld [vmem:[%s1911_s3 + $0x8] sm:$0xff] }
  0x36   : > { %553 = vmatpush.msra.mxu0 %v522_v29  ;;  %v621_v29 = vld [vmem:[%s1911_s3] sm:$0xff] }
  0x37   : > { %427 = vxpose.xlu0.b32.cont [4/16] %v411_v3, 128 }
  0x38   : > { %554 = vmatpush.msra.mxu0 %v521_v30 }
  0x3a   : > { %555 = vmatpush.msra.mxu0 %v520_v31 }
  0x3f   : > { %428 = vxpose.xlu0.b32.cont [5/16] %v412_v4, 128 }
  0x47   : > { %429 = vxpose.xlu0.b32.cont [6/16] %v413_v5, 128 }
  0x4f   : > { %430 = vxpose.xlu0.b32.cont [7/16] %v414_v6, 128 }
  0x57   : > { %431 = vxpose.xlu0.b32.cont [8/16] %v415_v7, 128 }
  0x5f   : > { %432 = vxpose.xlu0.b32.cont [9/16] %v416_v8, 128 }
  0x67   : > { %433 = vxpose.xlu0.b32.cont [10/16] %v417_v9, 128 }
  0x6f   : > { %434 = vxpose.xlu0.b32.cont [11/16] %v418_v10, 128 }
  0x77   : > { %435 = vxpose.xlu0.b32.cont [12/16] %v419_v11, 128 }
  0x7f   : > { %436 = vxpose.xlu0.b32.cont [13/16] %v420_v16, 128  ;;  %v626_v16 = vld [vmem:[%s1911_s3 + $0x28] sm:$0xff] }
  0x80   : > { %692 = vmatpush.msra.mxu1 %v626_v16  ;;  %v767_v16 = vld [vmem:[%s1895_s5 + $0x20] sm:$0xff] }
  0x87   : > { %437 = vxpose.xlu0.b32.cont [14/16] %v421_v21, 128  ;;  %v625_v21 = vld [vmem:[%s1911_s3 + $0x20] sm:$0xff] }
  0x88   : > { %693 = vmatpush.msra.mxu1 %v625_v21 }
  0x8a   : > { %694 = vmatpush.msra.mxu1 %v624_v22  ;;  %v764_v22 = vld [vmem:[%s1895_s5 + $0x8] sm:$0xff] }
  0x8f   : > { %438 = vxpose.xlu0.b32.cont [15/16] %v422_v24, 128  ;;  %v623_v24 = vld [vmem:[%s1911_s3 + $0x10] sm:$0xff] }
  0x90   : > { %695 = vmatpush.msra.mxu1 %v623_v24 }
  0x92   : > { %696 = vmatpush.msra.mxu1 %v622_v28 }
  0x94   : > { %697 = vmatpush.msra.mxu1 %v621_v29 }
  0x97   : > { %439 = vxpose.xlu0.b32.end [16/16] %v423_v25, 128 }
  0xc3   : > { %v440_v32 = vpop.trf.xlu0 }
  0xc4   : > { %v456_v33 = vadd.f32 1e-08, %v440_v32 }
  0xc6   : > { %1317 = vlog2.f32 %v456_v33 }
  0xcb   : > { %v441_v34 = vpop.trf.xlu0 }
  0xcc   : > { %v1318_v35 = vpop.eup %1317  ;;  %v457_v36 = vadd.f32 1e-08, %v441_v34 }
  0xcd   : > { %v473_v37 = vmul.f32 0.6931472, %v1318_v35 }
  0xce   : > { %1319 = vlog2.f32 %v457_v36 }
  0xcf   : > { %504 = vst [vmem:[%s1620_s29] sm:$0xff] %v473_v37  ;;  %556 = vmatmul.f32.vlgmr.msra.gmra.mxu0 %v473_v37 }
  0xd3   : > { %v442_v38 = vpop.trf.xlu0 }
  0xd4   : > { %v1320_v39 = vpop.eup %1319  ;;  %v458_v40 = vadd.f32 1e-08, %v442_v38 }
  0xd5   : > { %v475_v41 = vmul.f32 0.6931472, %v1320_v39 }
  0xd6   : > { %1321 = vlog2.f32 %v458_v40  ;;  %v1665_v40 = vld [vmem:[%s1912_s2] ss:$0 sm:$0xff] }
  0xd7   : > { %505 = vst [vmem:[%s1620_s29 + $0x8] sm:$0xff] %v475_v41  ;;  %559 = vmatmul.f32.gmra.mxu0 %v475_v41 }
  0xdb   : > { %v443_v42 = vpop.trf.xlu0 }
  0xdc   : > { %v1322_v43 = vpop.eup %1321  ;;  %v459_v44 = vadd.f32 1e-08, %v443_v42 }
  0xdd   : > { %v477_v45 = vmul.f32 0.6931472, %v1322_v43 }
  0xde   : > { %1323 = vlog2.f32 %v459_v44 }
  0xdf   : > { %506 = vst [vmem:[%s1620_s29 + $0x10] sm:$0xff] %v477_v45  ;;  %562 = vmatmul.f32.gmra.mxu0 %v477_v45 }
  0xe3   : > { %v444_v46 = vpop.trf.xlu0 }
  0xe4   : > { %v1324_v47 = vpop.eup %1323  ;;  %v460_v48 = vadd.f32 1e-08, %v444_v46 }
  0xe5   : > { %v479_v49 = vmul.f32 0.6931472, %v1324_v47 }
  0xe6   : > { %1325 = vlog2.f32 %v460_v48 }
  0xe7   : > { %507 = vst [vmem:[%s1620_s29 + $0x18] sm:$0xff] %v479_v49  ;;  %565 = vmatmul.f32.gmra.mxu0 %v479_v49 }
  0xeb   : > { %v445_v50 = vpop.trf.xlu0 }
  0xec   : > { %v1326_v51 = vpop.eup %1325  ;;  %v461_v52 = vadd.f32 1e-08, %v445_v50 }
  0xed   : > { %v481_v53 = vmul.f32 0.6931472, %v1326_v51 }
  0xee   : > { %1327 = vlog2.f32 %v461_v52 }
  0xef   : > { %508 = vst [vmem:[%s1620_s29 + $0x20] sm:$0xff] %v481_v53  ;;  %568 = vmatmul.f32.gmra.mxu0 %v481_v53 }
  0xf3   : > { %v446_v54 = vpop.trf.xlu0 }
  0xf4   : > { %v1328_v55 = vpop.eup %1327  ;;  %v462_v56 = vadd.f32 1e-08, %v446_v54 }
  0xf5   : > { %v483_v57 = vmul.f32 0.6931472, %v1328_v55 }
  0xf6   : > { %1329 = vlog2.f32 %v462_v56 }
  0xf7   : > { %509 = vst [vmem:[%s1620_s29 + $0x28] sm:$0xff] %v483_v57  ;;  %571 = vmatmul.f32.gmra.mxu0 %v483_v57 }
  0xfb   : > { %v447_v58 = vpop.trf.xlu0 }
  0xfc   : > { %v1330_v59 = vpop.eup %1329  ;;  %v463_v60 = vadd.f32 1e-08, %v447_v58 }
  0xfd   : > { %v485_v61 = vmul.f32 0.6931472, %v1330_v59 }
  0xfe   : > { %1331 = vlog2.f32 %v463_v60 }
  0xff   : > { %510 = vst [vmem:[%s1620_s29 + $0x30] sm:$0xff] %v485_v61  ;;  %574 = vmatmul.f32.gmra.mxu0 %v485_v61 }
 0x103   : > { %v448_v62 = vpop.trf.xlu0 }
 0x104   : > { %v1332_v63 = vpop.eup %1331  ;;  %v464_v0 = vadd.f32 1e-08, %v448_v62 }
 0x105   : > { %v487_v1 = vmul.f32 0.6931472, %v1332_v63 }
 0x106   : > { %1333 = vlog2.f32 %v464_v0 }
 0x107   : > { %511 = vst [vmem:[%s1620_s29 + $0x38] sm:$0xff] %v487_v1  ;;  %577 = vmatmul.f32.gmra.mxu0 %v487_v1 }
 0x10b   : > { %v449_v2 = vpop.trf.xlu0 }
 0x10c   : > { %v1334_v3 = vpop.eup %1333  ;;  %v465_v4 = vadd.f32 1e-08, %v449_v2 }
 0x10d   : > { %v489_v5 = vmul.f32 0.6931472, %v1334_v3 }
 0x10e   : > { %1335 = vlog2.f32 %v465_v4 }
 0x10f   : > { %512 = vst [vmem:[%s1620_s29 + $0x40] sm:$0xff] %v489_v5  ;;  %580 = vmatmul.f32.gmra.mxu0 %v489_v5 }
 0x113   : > { %v450_v6 = vpop.trf.xlu0 }
 0x114   : > { %v1336_v7 = vpop.eup %1335  ;;  %v466_v8 = vadd.f32 1e-08, %v450_v6 }
 0x115   : > { %v491_v9 = vmul.f32 0.6931472, %v1336_v7 }
 0x116   : > { %1337 = vlog2.f32 %v466_v8 }
 0x117   : > { %513 = vst [vmem:[%s1620_s29 + $0x48] sm:$0xff] %v491_v9  ;;  %583 = vmatmul.f32.gmra.mxu0 %v491_v9 }
 0x11b   : > { %v451_v10 = vpop.trf.xlu0 }
 0x11c   : > { %v1338_v11 = vpop.eup %1337  ;;  %v467_v12 = vadd.f32 1e-08, %v451_v10  ;;  %v770_v10 = vld [vmem:[%s1895_s5 + $0x38] sm:$0xff] }
 0x11d   : > { %v493_v13 = vmul.f32 0.6931472, %v1338_v11  ;;  %831 = vmatpush.msra.mxu2 %v770_v10  ;;  %v906_v10 = vld [vmem:[%s1897_s7 + $0x10] sm:$0xff] }
 0x11e   : > { %1339 = vlog2.f32 %v467_v12 }
 0x11f   : > { %514 = vst [vmem:[%s1620_s29 + $0x50] sm:$0xff] %v493_v13  ;;  %586 = vmatmul.f32.gmra.mxu0 %v493_v13  ;;  %v769_v13 = vld [vmem:[%s1895_s5 + $0x30] sm:$0xff] }
 0x120   : > { %832 = vmatpush.msra.mxu2 %v769_v13  ;;  %v905_v13 = vld [vmem:[%s1897_s7 + $0x8] sm:$0xff] }
 0x122   : > { %833 = vmatpush.msra.mxu2 %v768_v15  ;;  %v904_v15 = vld [vmem:[%s1897_s7] sm:$0xff] }
 0x123   : > { %v452_v17 = vpop.trf.xlu0 }
 0x124   : > { %v1340_v18 = vpop.eup %1339  ;;  %v468_v19 = vadd.f32 1e-08, %v452_v17  ;;  %v766_v17 = vld [vmem:[%s1895_s5 + $0x18] sm:$0xff]  ;;  %834 = vmatpush.msra.mxu2 %v767_v16 }
 0x125   : > { %v495_v20 = vmul.f32 0.6931472, %v1340_v18 }
 0x126   : > { %1341 = vlog2.f32 %v468_v19  ;;  %835 = vmatpush.msra.mxu2 %v766_v17 }
 0x127   : > { %515 = vst [vmem:[%s1620_s29 + $0x58] sm:$0xff] %v495_v20  ;;  %589 = vmatmul.f32.gmra.mxu0 %v495_v20  ;;  %v765_v20 = vld [vmem:[%s1895_s5 + $0x10] sm:$0xff] }
 0x128   : > { %836 = vmatpush.msra.mxu2 %v765_v20 }
 0x12a   : > { %837 = vmatpush.msra.mxu2 %v764_v22  ;;  %v1775_v22 = vld [vmem:[%s1896_s6] ss:$0 sm:$0xff] }
 0x12b   : > { %v453_v23 = vpop.trf.xlu0 }
 0x12c   : > { %v1342_v25 = vpop.eup %1341  ;;  %v469_v26 = vadd.f32 1e-08, %v453_v23  ;;  %v763_v23 = vld [vmem:[%s1895_s5] sm:$0xff] }
 0x12d   : > { %v497_v27 = vmul.f32 0.6931472, %v1342_v25  ;;  %838 = vmatpush.msra.mxu2 %v763_v23 }
 0x12e   : > { %1343 = vlog2.f32 %v469_v26 }
 0x12f   : > { %516 = vst [vmem:[%s1620_s29 + $0x60] sm:$0xff] %v497_v27  ;;  %592 = vmatmul.f32.gmra.mxu0 %v497_v27 }
 0x133   : > { %v454_v30 = vpop.trf.xlu0 }
 0x134   : > { %v1344_v31 = vpop.eup %1343  ;;  %v470_v32 = vadd.f32 1e-08, %v454_v30 }
 0x135   : > { %v499_v33 = vmul.f32 0.6931472, %v1344_v31 }
 0x136   : > { %1345 = vlog2.f32 %v470_v32 }
 0x137   : > { %517 = vst [vmem:[%s1620_s29 + $0x68] sm:$0xff] %v499_v33  ;;  %595 = vmatmul.f32.gmra.mxu0 %v499_v33  ;;  %v1726_v33 = vld [vmem:[%s1913_s4] ss:$0 sm:$0xff] }
 0x13b   : > { %v455_v34 = vpop.trf.xlu0 }
 0x13c   : > { %v1346_v35 = vpop.eup %1345  ;;  %v471_v36 = vadd.f32 1e-08, %v455_v34 }
 0x13d   : > { %v501_v37 = vmul.f32 0.6931472, %v1346_v35 }
 0x13e   : > { %1347 = vlog2.f32 %v471_v36 }
 0x13f   : > { %518 = vst [vmem:[%s1620_s29 + $0x70] sm:$0xff] %v501_v37  ;;  %598 = vmatmul.f32.gmra.mxu0 %v501_v37 }
 0x144   : > { %v1348_v38 = vpop.eup %1347 }
 0x145   : > { %v503_v39 = vmul.f32 0.6931472, %v1348_v38 }
 0x147   : > { %519 = vst [vmem:[%s1620_s29 + $0x78] sm:$0xff] %v503_v39  ;;  %601 = vmatmul.f32.gmra.mxu0 %v503_v39 }
 0x14c   : > { %v557_v41 = vpop.f32.mrf.mxu0 }
 0x14d   : > { %v558_v42 = vadd.f32 %v1665_v40, %v557_v41 }
 0x14f   : > { %v605_v43 = vmax.f32 %v558_v42, 0.0 }
 0x151   : > { %1200 = vmatmul.msk.f32.vlgmr.msra.gmra.mxu1 %vm633_vm0, %v605_v43 }
 0x154   : > { %v560_v44 = vpop.f32.mrf.mxu0 }
 0x155   : > { %v561_v45 = vadd.f32 %v1665_v40, %v560_v44 }
 0x157   : > { %v606_v46 = vmax.f32 %v561_v45, 0.0 }
 0x159   : > { %1201 = vmatmul.msk.f32.gmra.mxu1 %vm633_vm0, %v606_v46 }
 0x15c   : > { %v563_v47 = vpop.f32.mrf.mxu0 }
 0x15d   : > { %v564_v48 = vadd.f32 %v1665_v40, %v563_v47 }
 0x15f   : > { %v607_v49 = vmax.f32 %v564_v48, 0.0 }
 0x161   : > { %1202 = vmatmul.msk.f32.gmra.mxu1 %vm633_vm0, %v607_v49 }
 0x164   : > { %v566_v50 = vpop.f32.mrf.mxu0 }
 0x165   : > { %v567_v51 = vadd.f32 %v1665_v40, %v566_v50 }
 0x167   : > { %v608_v52 = vmax.f32 %v567_v51, 0.0 }
 0x169   : > { %1203 = vmatmul.msk.f32.gmra.mxu1 %vm633_vm0, %v608_v52 }
 0x16c   : > { %v569_v53 = vpop.f32.mrf.mxu0 }
 0x16d   : > { %v570_v54 = vadd.f32 %v1665_v40, %v569_v53 }
 0x16f   : > { %v609_v55 = vmax.f32 %v570_v54, 0.0 }
 0x171   : > { %1204 = vmatmul.msk.f32.gmra.mxu1 %vm633_vm0, %v609_v55 }
 0x174   : > { %v572_v56 = vpop.f32.mrf.mxu0 }
 0x175   : > { %v573_v57 = vadd.f32 %v1665_v40, %v572_v56 }
 0x177   : > { %v610_v58 = vmax.f32 %v573_v57, 0.0 }
 0x179   : > { %1205 = vmatmul.msk.f32.gmra.mxu1 %vm633_vm0, %v610_v58 }
 0x17c   : > { %v575_v59 = vpop.f32.mrf.mxu0 }
 0x17d   : > { %v576_v60 = vadd.f32 %v1665_v40, %v575_v59 }
 0x17f   : > { %v611_v61 = vmax.f32 %v576_v60, 0.0 }
 0x181   : > { %1206 = vmatmul.msk.f32.gmra.mxu1 %vm633_vm0, %v611_v61 }
 0x184   : > { %v578_v62 = vpop.f32.mrf.mxu0 }
 0x185   : > { %v579_v63 = vadd.f32 %v1665_v40, %v578_v62 }
 0x187   : > { %v612_v0 = vmax.f32 %v579_v63, 0.0 }
 0x189   : > { %1207 = vmatmul.msk.f32.gmra.mxu1 %vm633_vm0, %v612_v0 }
 0x18c   : > { %v581_v1 = vpop.f32.mrf.mxu0 }
 0x18d   : > { %v582_v2 = vadd.f32 %v1665_v40, %v581_v1 }
 0x18f   : > { %v613_v3 = vmax.f32 %v582_v2, 0.0 }
 0x191   : > { %1208 = vmatmul.msk.f32.gmra.mxu1 %vm633_vm0, %v613_v3 }
 0x194   : > { %v584_v4 = vpop.f32.mrf.mxu0 }
 0x195   : > { %v585_v5 = vadd.f32 %v1665_v40, %v584_v4 }
 0x197   : > { %v614_v6 = vmax.f32 %v585_v5, 0.0 }
 0x199   : > { %1209 = vmatmul.msk.f32.gmra.mxu1 %vm633_vm0, %v614_v6  ;;  %v907_v6 = vld [vmem:[%s1897_s7 + $0x18] sm:$0xff] }
 0x19a   : > { %973 = vmatpush.msra.mxu3 %v907_v6 }
 0x19c   : > { %v587_v7 = vpop.f32.mrf.mxu0  ;;  %974 = vmatpush.msra.mxu3 %v906_v10 }
 0x19d   : > { %v588_v8 = vadd.f32 %v1665_v40, %v587_v7 }
 0x19e   : > { %975 = vmatpush.msra.mxu3 %v905_v13 }
 0x19f   : > { %v615_v9 = vmax.f32 %v588_v8, 0.0 }
 0x1a0   : > { %976 = vmatpush.msra.mxu3 %v904_v15 }
 0x1a1   : > { %1210 = vmatmul.msk.f32.gmra.mxu1 %vm633_vm0, %v615_v9 }
 0x1a4   : > { %v590_v11 = vpop.f32.mrf.mxu0 }
 0x1a5   : > { %v591_v12 = vadd.f32 %v1665_v40, %v590_v11 }
 0x1a7   : > { %v616_v14 = vmax.f32 %v591_v12, 0.0 }
 0x1a9   : > { %1211 = vmatmul.msk.f32.gmra.mxu1 %vm633_vm0, %v616_v14 }
 0x1ac   : > { %v593_v18 = vpop.f32.mrf.mxu0 }
 0x1ad   : > { %v594_v19 = vadd.f32 %v1665_v40, %v593_v18 }
 0x1af   : > { %v617_v21 = vmax.f32 %v594_v19, 0.0 }
 0x1b1   : > { %1212 = vmatmul.msk.f32.gmra.mxu1 %vm633_vm0, %v617_v21 }
 0x1b4   : > { %v596_v24 = vpop.f32.mrf.mxu0 }
 0x1b5   : > { %v597_v25 = vadd.f32 %v1665_v40, %v596_v24 }
 0x1b7   : > { %v618_v26 = vmax.f32 %v597_v25, 0.0 }
 0x1b9   : > { %1213 = vmatmul.msk.f32.gmra.mxu1 %vm633_vm0, %v618_v26 }
 0x1bc   : > { %v599_v27 = vpop.f32.mrf.mxu0 }
 0x1bd   : > { %v600_v28 = vadd.f32 %v1665_v40, %v599_v27 }
 0x1bf   : > { %v619_v29 = vmax.f32 %v600_v28, 0.0 }
 0x1c1   : > { %1214 = vmatmul.msk.f32.gmra.mxu1 %vm633_vm0, %v619_v29 }
 0x1c4   : > { %v602_v30 = vpop.f32.mrf.mxu0 }
 0x1c5   : > { %v603_v31 = vadd.f32 %v1665_v40, %v602_v30 }
 0x1c7   : > { %v620_v32 = vmax.f32 %v603_v31, 0.0 }
 0x1c9   : > { %1215 = vmatmul.msk.f32.gmra.mxu1 %vm633_vm0, %v620_v32 }
 0x1ce   : > { %v699_v34 = vpop.f32.mrf.mxu1 }
 0x1cf   : > { %v700_v35 = vadd.f32 %v1726_v33, %v699_v34 }
 0x1d1   : > { %v747_v36 = vmax.f32 %v700_v35, 0.0 }
 0x1d3   : > { %1216 = vmatmul.msk.f32.vlgmr.msra.gmra.mxu2 %vm633_vm0, %v747_v36 }
 0x1d6   : > { %v702_v37 = vpop.f32.mrf.mxu1 }
 0x1d7   : > { %v703_v38 = vadd.f32 %v1726_v33, %v702_v37 }
 0x1d9   : > { %v748_v39 = vmax.f32 %v703_v38, 0.0 }
 0x1db   : > { %1217 = vmatmul.msk.f32.gmra.mxu2 %vm633_vm0, %v748_v39 }
 0x1de   : > { %v705_v40 = vpop.f32.mrf.mxu1 }
 0x1df   : > { %v706_v41 = vadd.f32 %v1726_v33, %v705_v40 }
 0x1e1   : > { %v749_v42 = vmax.f32 %v706_v41, 0.0 }
 0x1e3   : > { %1218 = vmatmul.msk.f32.gmra.mxu2 %vm633_vm0, %v749_v42 }
 0x1e6   : > { %v708_v43 = vpop.f32.mrf.mxu1 }
 0x1e7   : > { %v709_v44 = vadd.f32 %v1726_v33, %v708_v43 }
 0x1e9   : > { %v750_v45 = vmax.f32 %v709_v44, 0.0 }
 0x1eb   : > { %1219 = vmatmul.msk.f32.gmra.mxu2 %vm633_vm0, %v750_v45 }
 0x1ee   : > { %v711_v46 = vpop.f32.mrf.mxu1 }
 0x1ef   : > { %v712_v47 = vadd.f32 %v1726_v33, %v711_v46 }
 0x1f1   : > { %v751_v48 = vmax.f32 %v712_v47, 0.0 }
 0x1f3   : > { %1220 = vmatmul.msk.f32.gmra.mxu2 %vm633_vm0, %v751_v48 }
 0x1f6   : > { %v714_v49 = vpop.f32.mrf.mxu1 }
 0x1f7   : > { %v715_v50 = vadd.f32 %v1726_v33, %v714_v49 }
 0x1f9   : > { %v752_v51 = vmax.f32 %v715_v50, 0.0 }
 0x1fb   : > { %1221 = vmatmul.msk.f32.gmra.mxu2 %vm633_vm0, %v752_v51 }
 0x1fe   : > { %v717_v52 = vpop.f32.mrf.mxu1 }
 0x1ff   : > { %v718_v53 = vadd.f32 %v1726_v33, %v717_v52 }
 0x201   : > { %v753_v54 = vmax.f32 %v718_v53, 0.0 }
 0x203   : > { %1222 = vmatmul.msk.f32.gmra.mxu2 %vm633_vm0, %v753_v54 }
 0x206   : > { %v720_v55 = vpop.f32.mrf.mxu1 }
 0x207   : > { %v721_v56 = vadd.f32 %v1726_v33, %v720_v55 }
 0x209   : > { %v754_v57 = vmax.f32 %v721_v56, 0.0 }
 0x20b   : > { %1223 = vmatmul.msk.f32.gmra.mxu2 %vm633_vm0, %v754_v57 }
 0x20e   : > { %v723_v58 = vpop.f32.mrf.mxu1 }
 0x20f   : > { %v724_v59 = vadd.f32 %v1726_v33, %v723_v58 }
 0x211   : > { %v755_v60 = vmax.f32 %v724_v59, 0.0 }
 0x213   : > { %1224 = vmatmul.msk.f32.gmra.mxu2 %vm633_vm0, %v755_v60 }
 0x216   : > { %v726_v61 = vpop.f32.mrf.mxu1 }
 0x217   : > { %v727_v62 = vadd.f32 %v1726_v33, %v726_v61 }
 0x219   : > { %v756_v63 = vmax.f32 %v727_v62, 0.0 }
 0x21b   : > { %1225 = vmatmul.msk.f32.gmra.mxu2 %vm633_vm0, %v756_v63 }
 0x21e   : > { %v729_v0 = vpop.f32.mrf.mxu1 }
 0x21f   : > { %v730_v1 = vadd.f32 %v1726_v33, %v729_v0 }
 0x221   : > { %v757_v2 = vmax.f32 %v730_v1, 0.0 }
 0x223   : > { %1226 = vmatmul.msk.f32.gmra.mxu2 %vm633_vm0, %v757_v2 }
 0x226   : > { %v732_v3 = vpop.f32.mrf.mxu1 }
 0x227   : > { %v733_v4 = vadd.f32 %v1726_v33, %v732_v3 }
 0x229   : > { %v758_v5 = vmax.f32 %v733_v4, 0.0 }
 0x22b   : > { %1227 = vmatmul.msk.f32.gmra.mxu2 %vm633_vm0, %v758_v5 }
 0x22e   : > { %v735_v7 = vpop.f32.mrf.mxu1 }
 0x22f   : > { %v736_v8 = vadd.f32 %v1726_v33, %v735_v7 }
 0x231   : > { %v759_v9 = vmax.f32 %v736_v8, 0.0 }
 0x233   : > { %1228 = vmatmul.msk.f32.gmra.mxu2 %vm633_vm0, %v759_v9 }
 0x236   : > { %v738_v11 = vpop.f32.mrf.mxu1 }
 0x237   : > { %v739_v12 = vadd.f32 %v1726_v33, %v738_v11 }
 0x239   : > { %v760_v14 = vmax.f32 %v739_v12, 0.0 }
 0x23b   : > { %1229 = vmatmul.msk.f32.gmra.mxu2 %vm633_vm0, %v760_v14 }
 0x23e   : > { %v741_v16 = vpop.f32.mrf.mxu1 }
 0x23f   : > { %v742_v17 = vadd.f32 %v1726_v33, %v741_v16 }
 0x241   : > { %v761_v18 = vmax.f32 %v742_v17, 0.0 }
 0x243   : > { %1230 = vmatmul.msk.f32.gmra.mxu2 %vm633_vm0, %v761_v18 }
 0x246   : > { %v744_v19 = vpop.f32.mrf.mxu1 }
 0x247   : > { %v745_v20 = vadd.f32 %v1726_v33, %v744_v19 }
 0x249   : > { %v762_v21 = vmax.f32 %v745_v20, 0.0 }
 0x24b   : > { %1231 = vmatmul.msk.f32.gmra.mxu2 %vm633_vm0, %v762_v21 }
 0x256   : > { %v840_v23 = vpop.f32.mrf.mxu2 }
 0x257   : > { %v841_v24 = vadd.f32 %v1775_v22, %v840_v23 }
 0x259   : > { %v888_v25 = vmax.f32 %v841_v24, 0.0 }
 0x25b   : > { %1232 = vmatmul.msk.f32.vlgmr.msra.gmra.mxu3 %vm912_vm1, %v888_v25 }
 0x25e   : > { %v843_v26 = vpop.f32.mrf.mxu2 }
 0x25f   : > { %v844_v27 = vadd.f32 %v1775_v22, %v843_v26 }
 0x261   : > { %v889_v28 = vmax.f32 %v844_v27, 0.0 }
 0x263   : > { %1233 = vmatmul.msk.f32.gmra.mxu3 %vm912_vm1, %v889_v28 }
 0x266   : > { %v846_v29 = vpop.f32.mrf.mxu2 }
 0x267   : > { %v847_v30 = vadd.f32 %v1775_v22, %v846_v29 }
 0x269   : > { %v890_v31 = vmax.f32 %v847_v30, 0.0 }
 0x26b   : > { %1234 = vmatmul.msk.f32.gmra.mxu3 %vm912_vm1, %v890_v31 }
 0x26e   : > { %v849_v32 = vpop.f32.mrf.mxu2 }
 0x26f   : > { %v850_v33 = vadd.f32 %v1775_v22, %v849_v32 }
 0x271   : > { %v891_v34 = vmax.f32 %v850_v33, 0.0 }
 0x273   : > { %1235 = vmatmul.msk.f32.gmra.mxu3 %vm912_vm1, %v891_v34 }
 0x276   : > { %v852_v35 = vpop.f32.mrf.mxu2 }
 0x277   : > { %v853_v36 = vadd.f32 %v1775_v22, %v852_v35 }
 0x279   : > { %v892_v37 = vmax.f32 %v853_v36, 0.0 }
 0x27b   : > { %1236 = vmatmul.msk.f32.gmra.mxu3 %vm912_vm1, %v892_v37 }
 0x27e   : > { %v855_v38 = vpop.f32.mrf.mxu2 }
 0x27f   : > { %v856_v39 = vadd.f32 %v1775_v22, %v855_v38 }
 0x281   : > { %v893_v40 = vmax.f32 %v856_v39, 0.0 }
 0x283   : > { %1237 = vmatmul.msk.f32.gmra.mxu3 %vm912_vm1, %v893_v40 }
 0x286   : > { %v858_v41 = vpop.f32.mrf.mxu2 }
 0x287   : > { %v859_v42 = vadd.f32 %v1775_v22, %v858_v41 }
 0x289   : > { %v894_v43 = vmax.f32 %v859_v42, 0.0 }
 0x28b   : > { %1238 = vmatmul.msk.f32.gmra.mxu3 %vm912_vm1, %v894_v43 }
 0x28e   : > { %v861_v44 = vpop.f32.mrf.mxu2 }
 0x28f   : > { %v862_v45 = vadd.f32 %v1775_v22, %v861_v44 }
 0x291   : > { %v895_v46 = vmax.f32 %v862_v45, 0.0 }
 0x293   : > { %1239 = vmatmul.msk.f32.gmra.mxu3 %vm912_vm1, %v895_v46 }
 0x296   : > { %v864_v47 = vpop.f32.mrf.mxu2 }
 0x297   : > { %v865_v48 = vadd.f32 %v1775_v22, %v864_v47 }
 0x299   : > { %v896_v49 = vmax.f32 %v865_v48, 0.0 }
 0x29b   : > { %1240 = vmatmul.msk.f32.gmra.mxu3 %vm912_vm1, %v896_v49 }
 0x29e   : > { %v867_v50 = vpop.f32.mrf.mxu2 }
 0x29f   : > { %v868_v51 = vadd.f32 %v1775_v22, %v867_v50 }
 0x2a1   : > { %v897_v52 = vmax.f32 %v868_v51, 0.0 }
 0x2a3   : > { %1241 = vmatmul.msk.f32.gmra.mxu3 %vm912_vm1, %v897_v52 }
 0x2a6   : > { %v870_v53 = vpop.f32.mrf.mxu2 }
 0x2a7   : > { %v871_v54 = vadd.f32 %v1775_v22, %v870_v53 }
 0x2a9   : > { %v898_v55 = vmax.f32 %v871_v54, 0.0 }
 0x2ab   : > { %1242 = vmatmul.msk.f32.gmra.mxu3 %vm912_vm1, %v898_v55 }
 0x2ae   : > { %v873_v56 = vpop.f32.mrf.mxu2 }
 0x2af   : > { %v874_v57 = vadd.f32 %v1775_v22, %v873_v56 }
 0x2b1   : > { %v899_v58 = vmax.f32 %v874_v57, 0.0 }
 0x2b3   : > { %1243 = vmatmul.msk.f32.gmra.mxu3 %vm912_vm1, %v899_v58 }
 0x2b6   : > { %v876_v59 = vpop.f32.mrf.mxu2 }
 0x2b7   : > { %v877_v60 = vadd.f32 %v1775_v22, %v876_v59 }
 0x2b9   : > { %v900_v61 = vmax.f32 %v877_v60, 0.0 }
 0x2bb   : > { %1244 = vmatmul.msk.f32.gmra.mxu3 %vm912_vm1, %v900_v61 }
 0x2be   : > { %v879_v62 = vpop.f32.mrf.mxu2 }
 0x2bf   : > { %v880_v63 = vadd.f32 %v1775_v22, %v879_v62 }
 0x2c1   : > { %v901_v0 = vmax.f32 %v880_v63, 0.0 }
 0x2c3   : > { %1245 = vmatmul.msk.f32.gmra.mxu3 %vm912_vm1, %v901_v0 }
 0x2c6   : > { %v882_v1 = vpop.f32.mrf.mxu2 }
 0x2c7   : > { %v883_v2 = vadd.f32 %v1775_v22, %v882_v1 }
 0x2c9   : > { %v902_v3 = vmax.f32 %v883_v2, 0.0 }
 0x2cb   : > { %1246 = vmatmul.msk.f32.gmra.mxu3 %vm912_vm1, %v902_v3 }
 0x2ce   : > { %v885_v4 = vpop.f32.mrf.mxu2 }
 0x2cf   : > { %v886_v5 = vadd.f32 %v1775_v22, %v885_v4 }
 0x2d1   : > { %v903_v6 = vmax.f32 %v886_v5, 0.0 }
 0x2d3   : > { %1247 = vmatmul.msk.f32.gmra.mxu3 %vm912_vm1, %v903_v6 }
 0x2d4   : > { %1376 = shalt.err (!%p1373_p5)
}
 0x2d5   : > { %s1429_s24 = smov 128   ;;  %s1430_s29 = smov 8   ;;  %v1316_v7 = vld [vmem:[%s1898_s8] ss:$0 sm:$0xff]  ;;  %vm1026_vm2 = vcmask 130048  }
 0x2d6   : > { %1256 = dma.vmem_to_hbm [thread:$0]  (%p1526_p4), %s1072_s12, 2048, %s1074_s11, %s1053_s19, %s1429_s24, %s1429_s24, %s1430_s29  }
 0x2d7   : > { %s1914_s2 = sshll.u32 %s1543_s27, 7 }
 0x2d8   : > { %s1834_s4 = scalar_lea.vmem %s1899_s9, %s1914_s2 }
 0x2de   : > { %v978_v8 = vpop.f32.mrf.mxu3 }
 0x2df   : > { %v979_v9 = vadd.f32 %v1316_v7, %v978_v8 }
 0x2e1   : > { %1027 = vst.msk [vmem:[%s1834_s4] sm:$0xff] %vm1026_vm2, %v979_v9 }
 0x2e6   : > { %v981_v10 = vpop.f32.mrf.mxu3 }
 0x2e7   : > { %v982_v11 = vadd.f32 %v1316_v7, %v981_v10 }
 0x2e9   : > { %1028 = vst.msk [vmem:[%s1834_s4 + $0x8] sm:$0xff] %vm1026_vm2, %v982_v11 }
 0x2ee   : > { %v984_v12 = vpop.f32.mrf.mxu3 }
 0x2ef   : > { %v985_v13 = vadd.f32 %v1316_v7, %v984_v12 }
 0x2f1   : > { %1029 = vst.msk [vmem:[%s1834_s4 + $0x10] sm:$0xff] %vm1026_vm2, %v985_v13 }
 0x2f6   : > { %v987_v14 = vpop.f32.mrf.mxu3 }
 0x2f7   : > { %v988_v15 = vadd.f32 %v1316_v7, %v987_v14 }
 0x2f9   : > { %1030 = vst.msk [vmem:[%s1834_s4 + $0x18] sm:$0xff] %vm1026_vm2, %v988_v15 }
 0x2fe   : > { %v990_v16 = vpop.f32.mrf.mxu3 }
 0x2ff   : > { %v991_v17 = vadd.f32 %v1316_v7, %v990_v16 }
 0x301   : > { %1031 = vst.msk [vmem:[%s1834_s4 + $0x20] sm:$0xff] %vm1026_vm2, %v991_v17 }
 0x306   : > { %v993_v18 = vpop.f32.mrf.mxu3 }
 0x307   : > { %v994_v19 = vadd.f32 %v1316_v7, %v993_v18 }
 0x309   : > { %1032 = vst.msk [vmem:[%s1834_s4 + $0x28] sm:$0xff] %vm1026_vm2, %v994_v19 }
 0x30e   : > { %v996_v20 = vpop.f32.mrf.mxu3 }
 0x30f   : > { %v997_v21 = vadd.f32 %v1316_v7, %v996_v20 }
 0x311   : > { %1033 = vst.msk [vmem:[%s1834_s4 + $0x30] sm:$0xff] %vm1026_vm2, %v997_v21 }
 0x316   : > { %v999_v22 = vpop.f32.mrf.mxu3 }
 0x317   : > { %v1000_v23 = vadd.f32 %v1316_v7, %v999_v22 }
 0x319   : > { %1034 = vst.msk [vmem:[%s1834_s4 + $0x38] sm:$0xff] %vm1026_vm2, %v1000_v23 }
 0x31e   : > { %v1002_v24 = vpop.f32.mrf.mxu3 }
 0x31f   : > { %v1003_v25 = vadd.f32 %v1316_v7, %v1002_v24 }
 0x321   : > { %1035 = vst.msk [vmem:[%s1834_s4 + $0x40] sm:$0xff] %vm1026_vm2, %v1003_v25 }
 0x326   : > { %v1005_v26 = vpop.f32.mrf.mxu3 }
 0x327   : > { %v1006_v27 = vadd.f32 %v1316_v7, %v1005_v26 }
 0x329   : > { %1036 = vst.msk [vmem:[%s1834_s4 + $0x48] sm:$0xff] %vm1026_vm2, %v1006_v27 }
 0x32e   : > { %v1008_v28 = vpop.f32.mrf.mxu3 }
 0x32f   : > { %v1009_v29 = vadd.f32 %v1316_v7, %v1008_v28 }
 0x331   : > { %1037 = vst.msk [vmem:[%s1834_s4 + $0x50] sm:$0xff] %vm1026_vm2, %v1009_v29 }
 0x336   : > { %v1011_v30 = vpop.f32.mrf.mxu3 }
 0x337   : > { %v1012_v31 = vadd.f32 %v1316_v7, %v1011_v30 }
 0x339   : > { %1038 = vst.msk [vmem:[%s1834_s4 + $0x58] sm:$0xff] %vm1026_vm2, %v1012_v31 }
 0x33e   : > { %v1014_v32 = vpop.f32.mrf.mxu3 }
 0x33f   : > { %v1015_v33 = vadd.f32 %v1316_v7, %v1014_v32 }
 0x341   : > { %1039 = vst.msk [vmem:[%s1834_s4 + $0x60] sm:$0xff] %vm1026_vm2, %v1015_v33 }
 0x346   : > { %v1017_v34 = vpop.f32.mrf.mxu3 }
 0x347   : > { %v1018_v35 = vadd.f32 %v1316_v7, %v1017_v34 }
 0x349   : > { %1040 = vst.msk [vmem:[%s1834_s4 + $0x68] sm:$0xff] %vm1026_vm2, %v1018_v35 }
 0x34e   : > { %v1020_v36 = vpop.f32.mrf.mxu3 }
 0x34f   : > { %v1021_v37 = vadd.f32 %v1316_v7, %v1020_v36 }
 0x351   : > { %1041 = vst.msk [vmem:[%s1834_s4 + $0x70] sm:$0xff] %vm1026_vm2, %v1021_v37 }
 0x356   : > { %v1023_v38 = vpop.f32.mrf.mxu3 }
 0x357   : > { %v1024_v39 = vadd.f32 %v1316_v7, %v1023_v38 }
 0x359   : > { %1042 = vst.msk [vmem:[%s1834_s4 + $0x78] sm:$0xff] %vm1026_vm2, %v1024_v39 }
 0x35a PF: > { %p1262_p4 = scmp.ge.s32.totalorder %s1427_s18, 2  ;;  %s1100_s1 = sand.u32 1, %s1407_s13  }
 0x35b   : > { %s1101_s23 = scalar_lea.sflag [#allocation3], %s1100_s1 }
 0x35c   : > { %p1259_p6 = pnand %p1262_p4, %p1533_p8 }
 0x35e   : > { %p1260_p7 = pneg %p1259_p6 }
 0x360   : > { %1402 = dma.done.wait (%p1260_p7), %s1101_s23, 2048  }
 0x361   : > { %1404 = vsyncadd (%p1260_p7), %s1101_s23, 4294965248  ;;  %s24_s18 = sadd.s32 1, %s1427_s18   ;;  %s1915_s13 = smov %s1411_s14 }
 0x362   : > { %p21_p9 = scmp.ge.s32.totalorder %s24_s18, 4   ;;  %s1916_s14 = smov %s1415_s15 }
 0x363   : > { %s1917_s15 = smov %s1539_s26  ;;  %s1918_s16 = smov %s1423_s17 }
 0x364   : > { %s1919_s17 = smov %s1921_s21  ;;  %23 = sbr.rel (!%p21_p9) target bundleno = 10 (0xa), region = 103 }
 0x369   :  { %1107 = vsyncpa [#allocation3], 1 }
 0x36a   :  { %1109 = vsyncpa [#allocation3 + $0x1], 1 }

</bundles_post_ra>
